<compile_context>
chip_gen: v7x
topology: tpu7x:2x2x1
jax: 0.10.0
libtpu: 0.0.40
codegen_flags: <defaults>
</compile_context>

<pallas_src>
import functools

import jax
import jax.numpy as jnp
from jax import lax
from jax.experimental import pallas as pl
from jax.experimental.pallas import tpu as pltpu


def _tdnn_kernel(x_ref, w_ref, b_ref, o_ref, *, active_offsets, stride, t_tile):
    # x_ref: (b_tile, Cin, t_win)   w_ref: (Cout, K_act*Cin)
    # b_ref: (Cout, 1) f32          o_ref: (b_tile, Cout, t_tile)
    b_tile = o_ref.shape[0]

    def tap(b, off):
        if stride == 1:
            return x_ref[b, :, pl.ds(off, t_tile)]
        # Strided ref slice: avoids loading the full span + XLU downsample.
        return x_ref[b, :, pl.ds(off, t_tile, stride=stride)]

    # im2col: taps on the contraction (sublane) axis, batches on the lane axis
    # -> one deep MXU matmul per grid step (amortizes weight push / MRF pops,
    # keeps the matmul lane width at b_tile*t_tile even when t_out is short).
    cols = []
    for off in active_offsets:                       # static: active taps only
        per_b = [tap(b, off) for b in range(b_tile)]
        cols.append(per_b[0] if b_tile == 1 else jnp.concatenate(per_b, axis=1))
    xcol = cols[0] if len(cols) == 1 else jnp.concatenate(cols, axis=0)

    acc = jnp.dot(w_ref[...], xcol, preferred_element_type=jnp.float32)
    acc = acc + b_ref[...].astype(jnp.float32)       # (Cout, b_tile*t_tile)

    for b in range(b_tile):                          # static, lane-dense stores
        o_ref[b] = acc[:, b * t_tile:(b + 1) * t_tile].astype(o_ref.dtype)


def _vmem_capacity_bytes(default=64 * 1024 * 1024):
    try:
        info = pltpu.get_tpu_info()
        for name in ("vmem_capacity_bytes", "vmem_bytes", "vmem_size_bytes"):
            val = getattr(info, name, None)
            if val:
                return int(val)
    except Exception:
        pass
    return default


def tdnn_affine(x, weight, bias, context, *, pad=True, stride=1, groups=1,
                norm_w=False, norm_f=False, compute_dtype=None, t_tile_max=None):
    """TdnnAffine.forward.  x: (B, input_dim, T) -> (B, output_dim, T_out)."""
    assert x.ndim == 3
    assert groups == 1  # TODO(synk): grouped conv1d not implemented in the kernel
    out_dim, w_cin, tot_ctx = weight.shape
    left = context[0] if context[0] < 0 else 0
    right = context[-1] if context[-1] > 0 else 0
    assert tot_ctx == right - left + 1

    out_dtype = x.dtype
    B, c_in, t_raw = x.shape
    assert c_in == w_cin

    # ---- generation-aware budgets (v7x: 64 MiB/TC, v5e/v6e: 128 MiB) -------
    mib = 1024 * 1024
    vmem_cap = _vmem_capacity_bytes()
    vmem_limit = int(max(32 * mib, min(vmem_cap - 24 * mib, 100 * mib)))
    if t_tile_max is None:
        t_tile_max = 1024 if vmem_cap >= 96 * mib else 512
    t_tile_max = max(128, (int(t_tile_max) // 128) * 128)

    # ---- static tap selection + parameter prep (masked taps dropped) -------
    active_offsets = tuple(int(c - left) for c in context)
    k_act = len(active_offsets)
    w_act = weight[:, :, list(active_offsets)]              # (Cout, Cin, K_act)
    if norm_w:                                              # F.normalize(dim=1)
        nrm = jnp.sqrt(jnp.sum(w_act * w_act, axis=1, keepdims=True))
        w_act = w_act / jnp.maximum(nrm, 1e-12)
    # Tap-major flatten to match the kernel's im2col row ordering.
    w2d = jnp.transpose(w_act, (0, 2, 1)).reshape(out_dim, k_act * c_in)
    b_col = (bias if bias is not None
             else jnp.zeros((out_dim,), weight.dtype)).reshape(out_dim, 1)
    b_col = b_col.astype(jnp.float32)                       # bias stays f32

    if compute_dtype is not None:  # optional bf16 feed; accumulation stays f32
        x = x.astype(compute_dtype)
        w2d = w2d.astype(compute_dtype)

    # ---- time geometry: all pads merged into a single jnp.pad pass ---------
    pad_left = -left if pad else 0
    pad_right = right if pad else 0
    t_pad = t_raw + pad_left + pad_right
    assert t_pad >= tot_ctx
    t_out = (t_pad - tot_ctx) // stride + 1

    if t_out <= t_tile_max:
        t_tile, n_t = t_out, 1
    else:
        t_tile = t_tile_max
        for cand in range(t_tile_max, 0, -128):   # prefer an exact 128-mult divisor
            if t_out % cand == 0:
                t_tile = cand
                break
        n_t = pl.cdiv(t_out, t_tile)
    t_out_pad = n_t * t_tile
    t_in_need = (t_out_pad - 1) * stride + tot_ctx
    extra_right = max(0, t_in_need - t_pad)
    if pad_left or pad_right or extra_right:
        x = jnp.pad(x, ((0, 0), (0, 0), (pad_left, pad_right + extra_right)))
    t_in = t_pad + extra_right

    if norm_f:  # only reachable when tot_ctx == 1 (module disables it otherwise)
        nrm = jnp.sqrt(jnp.sum(x * x, axis=1, keepdims=True))
        x = x / jnp.maximum(nrm, 1e-12)

    # ---- batch / time tiling against the actual VMEM budget ----------------
    t_win = t_in if n_t == 1 else (t_tile - 1) * stride + tot_ctx
    x_esize = jnp.dtype(x.dtype).itemsize
    out_esize = jnp.dtype(out_dtype).itemsize
    w_bytes = w2d.size * x_esize + out_dim * 4

    def _blk_bytes(bt):  # double-buffered blocks + in-kernel temporaries
        xblk = bt * c_in * t_win * x_esize
        oblk = bt * out_dim * t_tile * out_esize
        xcol = k_act * c_in * bt * t_tile * x_esize
        acc = out_dim * bt * t_tile * 4
        return 2 * (xblk + oblk) + w_bytes + 2 * (xcol + acc)

    budget = vmem_limit // 2
    b_tile = 1
    for cand in (8, 4, 2, 1):
        if B % cand == 0 and _blk_bytes(cand) <= budget:
            b_tile = cand
            break
    n_b = B // b_tile

    # ---- present x: full window (n_t == 1) or halo'd time tiles ------------
    if n_t == 1:
        x_in = x                                            # (B, Cin, t_in)
        x_spec = pl.BlockSpec((b_tile, c_in, t_win), lambda bi, tj: (bi, 0, 0))
    else:
        starts = jnp.arange(n_t, dtype=jnp.int32) * (t_tile * stride)
        idx = starts[:, None] + jnp.arange(t_win, dtype=jnp.int32)[None, :]
        x_in = jnp.transpose(x[:, :, idx], (0, 2, 1, 3))    # (B, n_t, Cin, t_win)
        x_spec = pl.BlockSpec((b_tile, None, c_in, t_win),
                              lambda bi, tj: (bi, tj, 0, 0))

    kernel = functools.partial(_tdnn_kernel, active_offsets=active_offsets,
                               stride=stride, t_tile=t_tile)

    out = pl.pallas_call(
        kernel,
        out_shape=jax.ShapeDtypeStruct((B, out_dim, t_out_pad), out_dtype),
        grid=(n_b, n_t),
        in_specs=[
            x_spec,
            pl.BlockSpec((out_dim, k_act * c_in), lambda bi, tj: (0, 0)),
            pl.BlockSpec((out_dim, 1), lambda bi, tj: (0, 0)),
        ],
        out_specs=pl.BlockSpec((b_tile, out_dim, t_tile),
                               lambda bi, tj: (bi, 0, tj)),
        compiler_params=pltpu.CompilerParams(
            # Time tiles of x are independent halo windows (no shared resident
            # x block), so either axis may be sharded across TensorCores
            # without duplicating x HBM traffic.
            dimension_semantics=("parallel", "parallel"),
            vmem_limit_bytes=vmem_limit),
    )(x_in, w2d, b_col)

    return out[:, :, :t_out] if t_out_pad != t_out else out


def tdnn_affine_ref(x, weight, bias, context, *, pad=True, stride=1):
    """Pure-JAX reference (mirrors the F.conv1d path) for correctness checks."""
    out_dim, _, tot_ctx = weight.shape
    left = context[0] if context[0] < 0 else 0
    right = context[-1] if context[-1] > 0 else 0
    filters = weight
    if len(context) != tot_ctx:
        mask = jnp.array([1.0 if (i + left) in context else 0.0
                          for i in range(tot_ctx)], dtype=weight.dtype)
        filters = filters * mask[None, None, :]
    if pad:
        x = jnp.pad(x, ((0, 0), (0, 0), (-left, right)))
    out = lax.conv_general_dilated(
        x, filters, window_strides=(stride,), padding="VALID",
        dimension_numbers=("NCH", "OIH", "NCH"))
    if bias is not None:
        out = out + bias[None, :, None]
    return out


if __name__ == "__main__":
    key = jax.random.PRNGKey(0)
    keys = jax.random.split(key, 8)

    # Config 1: TdnnAffine(16, 32, context=[-2, 0, 2]) — masked taps, zero bias.
    B, T, in1, out1 = 2, 24, 16, 32
    ctx1 = [-2, 0, 2]
    tot1 = ctx1[-1] - ctx1[0] + 1                           # 5 (3 active taps)
    x1 = jax.random.normal(keys[0], (B, in1, T), dtype=jnp.float32)
    w1 = 0.01 * jax.random.normal(keys[1], (out1, in1, tot1), dtype=jnp.float32)
    b1 = jnp.zeros((out1,), dtype=jnp.float32)
    o1 = jax.block_until_ready(tdnn_affine(x1, w1, b1, ctx1))
    r1 = jax.block_until_ready(tdnn_affine_ref(x1, w1, b1, ctx1))
    assert o1.shape == (B, out1, T), o1.shape
    assert jnp.allclose(o1, r1, rtol=1e-5, atol=1e-5), \
        float(jnp.max(jnp.abs(o1 - r1)))

    # Config 2: context=[0] (linear-layer case), nonzero bias.
    in2, out2, T2 = 8, 16, 32
    x2 = jax.random.normal(keys[2], (B, in2, T2), dtype=jnp.float32)
    w2 = 0.01 * jax.random.normal(keys[3], (out2, in2, 1), dtype=jnp.float32)
    b2 = jax.random.normal(keys[4], (out2,), dtype=jnp.float32)
    o2 = jax.block_until_ready(tdnn_affine(x2, w2, b2, [0]))
    r2 = jax.block_until_ready(tdnn_affine_ref(x2, w2, b2, [0]))
    assert o2.shape == (B, out2, T2), o2.shape
    assert jnp.allclose(o2, r2, rtol=1e-5, atol=1e-5), \
        float(jnp.max(jnp.abs(o2 - r2)))

    # Config 3: long T forcing the staged time-tiled x path (512 % 128 == 0,
    # so the divisor tiling skips both the halo re-pad and the output slice).
    B3, T3 = 4, 512
    x3 = jax.random.normal(keys[5], (B3, in1, T3), dtype=jnp.float32)
    o3 = jax.block_until_ready(tdnn_affine(x3, w1, b1, ctx1, t_tile_max=128))
    r3 = jax.block_until_ready(tdnn_affine_ref(x3, w1, b1, ctx1))
    assert o3.shape == (B3, out1, T3), o3.shape
    assert jnp.allclose(o3, r3, rtol=1e-5, atol=1e-5), \
        float(jnp.max(jnp.abs(o3 - r3)))

    # Config 4: non-divisible T_out -> halo pad (merged into the single pad
    # call) + trailing slice of the padded output.
    T4 = 200
    x4 = jax.random.normal(keys[6], (B, in2, T4), dtype=jnp.float32)
    o4 = jax.block_until_ready(tdnn_affine(x4, w2, b2, [0], t_tile_max=128))
    r4 = jax.block_until_ready(tdnn_affine_ref(x4, w2, b2, [0]))
    assert o4.shape == (B, out2, T4), o4.shape
    assert jnp.allclose(o4, r4, rtol=1e-5, atol=1e-5), \
        float(jnp.max(jnp.abs(o4 - r4)))

    # Config 5: bf16 feed (f32 accumulation) — relaxed tolerance vs f32 ref.
    o5 = jax.block_until_ready(
        tdnn_affine(x1, w1, b1, ctx1, compute_dtype=jnp.bfloat16))
    assert o5.shape == (B, out1, T), o5.shape
    assert jnp.allclose(o5, r1, rtol=5e-2, atol=1e-2), \
        float(jnp.max(jnp.abs(o5 - r1)))

    print("KERNEL_OK")
</pallas_src>

<mosaic_0001>
module attributes {stable_mosaic.version = 11 : i64} {
  func.func @_tdnn_kernel(%arg0: i32, %arg1: i32, %arg2: memref<2x16x28xf32, #tpu.memory_space<vmem>>, %arg3: memref<32x48xf32, #tpu.memory_space<vmem>>, %arg4: memref<32x1xf32, #tpu.memory_space<vmem>>, %arg5: memref<2x32x24xf32, #tpu.memory_space<vmem>>) attributes {dimension_semantics = [#tpu.dimension_semantics<parallel>, #tpu.dimension_semantics<parallel>], iteration_bounds = array<i64: 1, 1>, scalar_prefetch = 0 : i64, scratch_operands = 0 : i64, tpu.core_type = #tpu.core_type<tc>, window_params = [{transform_indices = @transform_0, window_bounds = array<i64: 2, 16, 28>}, {pipeline_mode = #tpu.pipeline_mode<synchronous>, transform_indices = @transform_1, window_bounds = array<i64: 32, 48>}, {pipeline_mode = #tpu.pipeline_mode<synchronous>, transform_indices = @transform_2, window_bounds = array<i64: 32, 1>}, {transform_indices = @transform_3, window_bounds = array<i64: 2, 32, 24>}]} {
    %c0 = arith.constant 0 : index
    %c0_0 = arith.constant 0 : index
    %c0_1 = arith.constant 0 : index
    %0 = vector.load %arg2[%c0, %c0_0, %c0_1] : memref<2x16x28xf32, #tpu.memory_space<vmem>>, vector<1x16x24xf32>
    %1 = vector.shape_cast %0 : vector<1x16x24xf32> to vector<16x24xf32>
    %c1 = arith.constant 1 : index
    %c0_2 = arith.constant 0 : index
    %c0_3 = arith.constant 0 : index
    %2 = vector.load %arg2[%c1, %c0_2, %c0_3] : memref<2x16x28xf32, #tpu.memory_space<vmem>>, vector<1x16x24xf32>
    %3 = vector.shape_cast %2 : vector<1x16x24xf32> to vector<16x24xf32>
    %4 = tpu.concatenate %1, %3 in 1 : vector<16x24xf32>, vector<16x24xf32> -> vector<16x48xf32>
    %c0_4 = arith.constant 0 : index
    %c0_5 = arith.constant 0 : index
    %c2 = arith.constant 2 : index
    %5 = vector.load %arg2[%c0_4, %c0_5, %c2] : memref<2x16x28xf32, #tpu.memory_space<vmem>>, vector<1x16x24xf32>
    %6 = vector.shape_cast %5 : vector<1x16x24xf32> to vector<16x24xf32>
    %c1_6 = arith.constant 1 : index
    %c0_7 = arith.constant 0 : index
    %c2_8 = arith.constant 2 : index
    %7 = vector.load %arg2[%c1_6, %c0_7, %c2_8] : memref<2x16x28xf32, #tpu.memory_space<vmem>>, vector<1x16x24xf32>
    %8 = vector.shape_cast %7 : vector<1x16x24xf32> to vector<16x24xf32>
    %9 = tpu.concatenate %6, %8 in 1 : vector<16x24xf32>, vector<16x24xf32> -> vector<16x48xf32>
    %c0_9 = arith.constant 0 : index
    %c0_10 = arith.constant 0 : index
    %c4 = arith.constant 4 : index
    %10 = vector.load %arg2[%c0_9, %c0_10, %c4] : memref<2x16x28xf32, #tpu.memory_space<vmem>>, vector<1x16x24xf32>
    %11 = vector.shape_cast %10 : vector<1x16x24xf32> to vector<16x24xf32>
    %c1_11 = arith.constant 1 : index
    %c0_12 = arith.constant 0 : index
    %c4_13 = arith.constant 4 : index
    %12 = vector.load %arg2[%c1_11, %c0_12, %c4_13] : memref<2x16x28xf32, #tpu.memory_space<vmem>>, vector<1x16x24xf32>
    %13 = vector.shape_cast %12 : vector<1x16x24xf32> to vector<16x24xf32>
    %14 = tpu.concatenate %11, %13 in 1 : vector<16x24xf32>, vector<16x24xf32> -> vector<16x48xf32>
    %15 = tpu.concatenate %4, %9, %14 in 0 : vector<16x48xf32>, vector<16x48xf32>, vector<16x48xf32> -> vector<48x48xf32>
    %c0_14 = arith.constant 0 : index
    %c0_15 = arith.constant 0 : index
    %16 = vector.load %arg3[%c0_14, %c0_15] : memref<32x48xf32, #tpu.memory_space<vmem>>, vector<32x48xf32>
    %cst = arith.constant dense<0.000000e+00> : vector<32x48xf32>
    %17 = tpu.matmul %16, %15, %cst {dimension_numbers = #tpu.dot_dimension_numbers<[1], [0], [0], [1], [0, 0, 1, 1], [], []>} : vector<32x48xf32>, vector<48x48xf32>, vector<32x48xf32> -> vector<32x48xf32>
    %c0_16 = arith.constant 0 : index
    %c0_17 = arith.constant 0 : index
    %18 = vector.load %arg4[%c0_16, %c0_17] : memref<32x1xf32, #tpu.memory_space<vmem>>, vector<32x1xf32>
    %19 = vector.broadcast %18 : vector<32x1xf32> to vector<32x48xf32>
    %20 = arith.addf %17, %19 : vector<32x48xf32>
    %21 = vector.extract_strided_slice %20 {offsets = [0, 0], sizes = [32, 24], strides = [1, 1]} : vector<32x48xf32> to vector<32x24xf32>
    %c0_18 = arith.constant 0 : index
    %c0_19 = arith.constant 0 : index
    %c0_20 = arith.constant 0 : index
    %22 = vector.load %arg5[%c0_18, %c0_19, %c0_20] : memref<2x32x24xf32, #tpu.memory_space<vmem>>, vector<1x32x24xf32>
    %23 = vector.shape_cast %22 : vector<1x32x24xf32> to vector<32x24xf32>
    %24 = vector.shape_cast %21 : vector<32x24xf32> to vector<1x32x24xf32>
    tpu.vector_store %arg5[%c0_18, %c0_19, %c0_20], %24 {strides = array<i32>} : memref<2x32x24xf32, #tpu.memory_space<vmem>>, vector<1x32x24xf32>,
    %25 = vector.extract_strided_slice %20 {offsets = [0, 24], sizes = [32, 24], strides = [1, 1]} : vector<32x48xf32> to vector<32x24xf32>
    %c1_21 = arith.constant 1 : index
    %c0_22 = arith.constant 0 : index
    %c0_23 = arith.constant 0 : index
    %26 = vector.load %arg5[%c1_21, %c0_22, %c0_23] : memref<2x32x24xf32, #tpu.memory_space<vmem>>, vector<1x32x24xf32>
    %27 = vector.shape_cast %26 : vector<1x32x24xf32> to vector<32x24xf32>
    %28 = vector.shape_cast %25 : vector<32x24xf32> to vector<1x32x24xf32>
    tpu.vector_store %arg5[%c1_21, %c0_22, %c0_23], %28 {strides = array<i32>} : memref<2x32x24xf32, #tpu.memory_space<vmem>>, vector<1x32x24xf32>,
    return
  }
  func.func @transform_0(%arg0: i32, %arg1: i32) -> (i32, i32, i32) {
    %c0_i32 = arith.constant 0 : i32
    %c0_i32_0 = arith.constant 0 : i32
    %c0_i32_1 = arith.constant 0 : i32
    return %arg0, %c0_i32, %c0_i32_0 : i32, i32, i32
  }
  func.func @transform_1(%arg0: i32, %arg1: i32) -> (i32, i32) {
    %c0_i32 = arith.constant 0 : i32
    %c0_i32_0 = arith.constant 0 : i32
    %c0_i32_1 = arith.constant 0 : i32
    return %c0_i32, %c0_i32_0 : i32, i32
  }
  func.func @transform_2(%arg0: i32, %arg1: i32) -> (i32, i32) {
    %c0_i32 = arith.constant 0 : i32
    %c0_i32_0 = arith.constant 0 : i32
    %c0_i32_1 = arith.constant 0 : i32
    return %c0_i32, %c0_i32_0 : i32, i32
  }
  func.func @transform_3(%arg0: i32, %arg1: i32) -> (i32, i32, i32) {
    %c0_i32 = arith.constant 0 : i32
    %c0_i32_0 = arith.constant 0 : i32
    return %arg0, %c0_i32, %arg1 : i32, i32, i32
  }
}

</mosaic_0001>

<bundles_post_ra>
// kernel: tpu_custom_call.1
= control target key start
LH: loop header
LB: loop body
LE: loop exit
PB: predicated region body
PF: predicated region fallthrough
CT: control target
= control target key end

     0   :  { %8 = vsyncpa [#allocation3], 0  ;;  %s347_s12 = smov [#allocation2]   ;;  %s455_s0 = inlined_call_operand.vmem [shape: f32[2,16,28], index: 0, kind: input, shape index: {}]   ;;  %s456_s1 = inlined_call_operand.hbm [shape: f32[32,48], index: 1, kind: input, shape index: {}]   ;;  %s457_s2 = inlined_call_operand.vmem [shape: f32[32,1], index: 2, kind: input, shape index: {}]   ;;  %s458_s3 = inlined_call_operand.vmem [shape: f32[2,32,24], index: 3, kind: output, shape index: {}]  }
   0x1   :  { %s16_s13 = sshll.u32 %s347_s12, 4  ;;  %s323_s16 = scalar_lea.hbm %s456_s1, 512  ;;  %s17_s13 = int_to_ptr.vmem [resolvable:$true] %s16_s13 }
   0x2   :  { %p324_p0 = scmp.ne.s32.totalorder %s456_s1, %s323_s16  ;;  %p327_p1 = scmp.lt.u32.totalorder %s323_s16, %s456_s1 }
   0x4   :  { %p329_p2 = pnand %p327_p1, %p324_p0 }
   0x6   :  { %332 = shalt.err (!%p329_p2)
}
   0x7   :  { %s333_s21 = scalar_lea.vmem %s17_s13, 512  ;;  %p338_p4 = scmp.lt.s32.totalorder %s17_s13, %s17_s13 }
   0x8   :  { %p334_p3 = scmp.ne.s32.totalorder %s17_s13, %s333_s21  ;;  %p339_p5 = scmp.lt.s32.totalorder %s333_s21, %s333_s21 }
   0xa   :  { %p340_p6 = por %p339_p5, %p338_p4 }
   0xc   :  { %p341_p7 = pnand %p340_p6, %p334_p3 }
   0xe   :  { %344 = shalt.err (!%p341_p7)
}
   0xf   :  { %s348_s22 = smov 128   ;;  %s349_s23 = smov 8  }
  0x10   :  { %22 = dma.hbm_to_vmem [thread:$0]  %s456_s1, 512, %s17_s13, [#allocation3], %s348_s22, %s348_s22, %s349_s23  }
  0x11   :  { %345 = dma.done.wait [#allocation3], 512  }
  0x12   :  { %346 = vsyncadd [#allocation3], 4294966784  ;;  %v230_v0 = vld [vmem:[%s455_s0 + $0x10] sm:$0xff]  ;;  %v231_v1 = vld [vmem:[%s455_s0 + $0x18] sm:$0xff]  ;;  %s350_s1 = smov 24   ;;  %s351_s7 = smov 22  }
  0x13   :  { %v28_v2 = vld [vmem:[%s455_s0] sm:$0xff]  ;;  %v296_v3 = vpack.i.bf16 %v231_v1, %v230_v0  ;;  %v29_v4 = vld [vmem:[%s455_s0 + $0x8] sm:$0xff]  ;;  %vm102_vm0 = vcmask 392192   ;;  %v76_v7 = vld [vmem:[#allocation2 + $0x10] sm:$0xff]  ;;  %s352_s8 = smov 126   ;;  %s353_s9 = smov 124  }
  0x14   :  { %v301_v5 = vpack.i.bf16 %v29_v4, %v28_v2  ;;  %v74_v6 = vld [vmem:[#allocation2] sm:$0xff]  ;;  %265 = vmatprep.mubr.msk.f32.mxu1 %vm102_vm0, %v76_v7  ;;  %v354_v8 = vmov 0   ;;  %s355_s11 = smov 20   ;;  %v80_v10 = vld [vmem:[%s457_s2 + $0x10] sm:$0xff]  ;;  %v79_v11 = vld [vmem:[%s457_s2 + $0x8] sm:$0xff]  ;;  %vm41_vm1 = vcmask 195584  }
  0x15   :  { %297 = vrot.lane.b32.xlu0 %v296_v3, %s350_s1  ;;  %307 = vrot.lane.b32.xlu1 %v296_v3, %s351_s7  ;;  %v78_v9 = vld [vmem:[%s457_s2] sm:$0xff]  ;;  %v81_v12 = vld [vmem:[%s457_s2 + $0x18] sm:$0xff]  ;;  %v75_v37 = vld [vmem:[#allocation2 + $0x8] sm:$0xff]  ;;  %s356_s21 = smov 104  }
  0x16   :  { %262 = vmatprep.mubr.msk.f32.mxu0 %vm102_vm0, %v74_v6  ;;  %321 = vset.pattern.permute.xlu1 %v354_v8  ;;  %v77_v38 = vld [vmem:[#allocation2 + $0x18] sm:$0xff] }
  0x17   :  { %322 = vset.pattern.permute.xlu0 %v354_v8 }
  0x19   :  { %302 = vrot.lane.b32.xlu0 %v301_v5, %s352_s8  ;;  %312 = vrot.lane.b32.xlu1 %v301_v5, %s353_s9 }
  0x1d   :  { %317 = vrot.lane.b32.xlu0 %v296_v3, %s355_s11  ;;  %84 = vperm.xlu1 %321, %v78_v9  }
  0x21   :  { %94 = vperm.xlu1 %321, %v80_v10   ;;  %89 = vperm.xlu0 %322, %v79_v11  }
  0x25   :  { %99 = vperm.xlu1 %321, %v81_v12  }
  0x87   :  { %v298_v13 = vpop.permute.xlu0 %297  ;;  %v308_v14 = vpop.permute.xlu1 %307 }
  0x88   :  { %v300_v15 = vunpack.i.h.bf16 %v298_v13  ;;  %v299_v16 = vunpack.i.l.bf16 %v298_v13  ;;  %v310_v19 = vunpack.i.h.bf16 %v308_v14  ;;  %v309_v20 = vunpack.i.l.bf16 %v308_v14 }
  0x8a   :  { %v42_v17 = vsel %vm41_vm1, %v28_v2, %v299_v16  ;;  %v43_v18 = vsel %vm41_vm1, %v29_v4, %v300_v15 }
  0x8b   :  { %v268_v21 = vpack.c.bf16 %v43_v18, %v42_v17  ;;  %v303_v22 = vpop.permute.xlu0 %302  ;;  %v313_v23 = vpop.permute.xlu1 %312 }
  0x8c   :  { %v305_v24 = vunpack.i.h.bf16 %v303_v22  ;;  %v304_v25 = vunpack.i.l.bf16 %v303_v22  ;;  %v315_v28 = vunpack.i.h.bf16 %v313_v23  ;;  %v314_v29 = vunpack.i.l.bf16 %v313_v23 }
  0x8d   :  { %269 = vmatprep.subr.bf16.mxu0 %v268_v21  ;;  %280 = vmatprep.subr.bf16.mxu1 %v268_v21 }
  0x8e   :  { %v59_v26 = vsel %vm41_vm1, %v305_v24, %v310_v19  ;;  %v58_v27 = vsel %vm41_vm1, %v304_v25, %v309_v20  ;;  %271 = vmatpush3.bf16.msra.mxu0 %v268_v21  ;;  %283 = vmatpush3.bf16.msra.mxu1 %v268_v21 }
  0x8f   :  { %v272_v30 = vpack.c.bf16 %v59_v26, %v58_v27  ;;  %v318_v31 = vpop.permute.xlu0 %317 }
  0x90   :  { %v320_v32 = vunpack.i.h.bf16 %v318_v31  ;;  %v319_v33 = vunpack.i.l.bf16 %v318_v31 }
  0x91   :  { %273 = vmatprep.subr.bf16.mxu0 %v272_v30  ;;  %281 = vmatprep.subr.bf16.mxu1 %v272_v30 }
  0x92   :  { %v73_v34 = vsel %vm41_vm1, %v315_v28, %v320_v32  ;;  %v72_v35 = vsel %vm41_vm1, %v314_v29, %v319_v33  ;;  %275 = vmatpush3.bf16.msra.mxu0 %v272_v30  ;;  %284 = vmatpush3.bf16.msra.mxu1 %v272_v30 }
  0x93   :  { %v276_v36 = vpack.c.bf16 %v73_v34, %v72_v35 }
  0x95   :  { %277 = vmatprep.subr.bf16.mxu0 %v276_v36  ;;  %282 = vmatprep.subr.bf16.mxu1 %v276_v36 }
  0x96   :  { %279 = vmatpush3.bf16.msra.mxu0 %v276_v36  ;;  %285 = vmatpush3.bf16.msra.mxu1 %v276_v36 }
  0x99   :  { %263 = vmatmul.mubr.msk.f32.vlgmr.msra.gmra.mrb[0].mxu0 %vm102_vm0, %v75_v37  ;;  %266 = vmatmul.mubr.msk.f32.vlgmr.msra.gmra.mrb[0].mxu1 %vm102_vm0, %v77_v38 }
  0x9c   :  { %v85_v39 = vpop.permute.xlu1 %84 }
  0xa0   :  { %v95_v40 = vpop.permute.xlu1 %94  ;;  %v90_v41 = vpop.permute.xlu0 %89 }
  0xa4   :  { %v100_v42 = vpop.permute.xlu1 %99 }
 0x16c   :  { %v264_v43 = vpop.f32.mrb[0].mxu0  ;;  %v267_v44 = vpop.f32.mrb[0].mxu1 }
 0x16d   :  { %v187_v45 = vadd.f32 %v264_v43, %v90_v41  ;;  %v197_v46 = vadd.f32 %v267_v44, %v100_v42  ;;  %v181_v47 = vpop.f32.mrb[1].mxu0  ;;  %v191_v48 = vpop.f32.mrb[1].mxu1 }
 0x16e   :  { %v182_v49 = vadd.f32 %v181_v47, %v85_v39  ;;  %v192_v50 = vadd.f32 %v191_v48, %v95_v40 }
 0x16f   :  { %201 = vst.msk [vmem:[%s458_s3 + $0x8] sm:$0xff] %vm41_vm1, %v187_v45  ;;  %203 = vst.msk [vmem:[%s458_s3 + $0x18] sm:$0xff] %vm41_vm1, %v197_v46  ;;  %210 = vrot.lane.b32.xlu1 %v187_v45, %s356_s21 }
 0x170   :  { %200 = vst.msk [vmem:[%s458_s3] sm:$0xff] %vm41_vm1, %v182_v49  ;;  %202 = vst.msk [vmem:[%s458_s3 + $0x10] sm:$0xff] %vm41_vm1, %v192_v50  ;;  %208 = vrot.lane.b32.xlu0 %v182_v49, %s356_s21 }
 0x173   :  { %214 = vrot.lane.b32.xlu1 %v197_v46, %s356_s21 }
 0x174   :  { %212 = vrot.lane.b32.xlu0 %v192_v50, %s356_s21 }
 0x1e1   :  { %v211_v51 = vpop.permute.xlu1 %210 }
 0x1e2   :  { %237 = vst.msk [vmem:[%s458_s3 + $0x28] sm:$0xff] %vm41_vm1, %v211_v51  ;;  %v209_v52 = vpop.permute.xlu0 %208 }
 0x1e3   :  { %236 = vst.msk [vmem:[%s458_s3 + $0x20] sm:$0xff] %vm41_vm1, %v209_v52 }
 0x1e5   :  { %v215_v53 = vpop.permute.xlu1 %214 }
 0x1e6   :  { %239 = vst.msk [vmem:[%s458_s3 + $0x38] sm:$0xff] %vm41_vm1, %v215_v53  ;;  %v213_v54 = vpop.permute.xlu0 %212 }
 0x1e7   :  { %238 = vst.msk [vmem:[%s458_s3 + $0x30] sm:$0xff] %vm41_vm1, %v213_v54 }
 0x1e8   :  { %229 = vsyncpa [#allocation3], 1 }

</bundles_post_ra>
